<compile_context>
chip_gen: v5e
topology: v5e:2x2
jax: 0.10.0
libtpu: 0.0.40
codegen_flags: <defaults>
</compile_context>

<pallas_src>
import functools

import jax
import jax.numpy as jnp
from jax.experimental import pallas as pl
from jax.experimental.pallas import tpu as pltpu

BN_EPS = 1e-5
LANE = 128        # TPU lane width; degree block padded to one lane group
OUT_PAD = 128     # final output padded 2 -> 128 lanes (lane-dense store)


# ----------------------------------------------------------------------------
# Fused Pallas kernel
# ----------------------------------------------------------------------------
def _bn_train(x, gamma, beta):
    # PyTorch BatchNorm1d .train(): batch mean, biased variance.
    # One-pass stats; clamp guards the E[x^2]-E[x]^2 cancellation.
    m = jnp.mean(x, axis=0, keepdims=True)
    var = jnp.maximum(jnp.mean(x * x, axis=0, keepdims=True) - m * m, 0.0)
    return (x - m) * jax.lax.rsqrt(var + BN_EPS) * gamma + beta


def _fused_kernel(pooled_ref, degpad_ref,
                  wc_ref, bc_ref,
                  g1_ref, be1_ref, w1_ref, b1_ref,
                  g2_ref, be2_ref, w2_ref, b2_ref,
                  out_ref, *, inv_s, batch, d):
    # --- encoder stand-in (u and v batched as [2B, D]): tanh(mean @ Wc + bc),
    #     mean = sum * inv_s folded into the matmul input.
    emb = jnp.tanh(
        jnp.dot(pooled_ref[...] * inv_s, wc_ref[...],
                preferred_element_type=jnp.float32) + bc_ref[...])
    u_emb = emb[:batch]          # [B, D]
    v_emb = emb[batch:]          # [B, D]

    # --- BN1: per-column, computed blockwise on the lane-aligned layout
    #     [deg|pad (128) , u_emb (D) , v_emb (D)]
    xn_deg = _bn_train(degpad_ref[...], g1_ref[:, :LANE], be1_ref[:, :LANE])
    xn_u = _bn_train(u_emb, g1_ref[:, LANE:LANE + d], be1_ref[:, LANE:LANE + d])
    xn_v = _bn_train(v_emb, g1_ref[:, LANE + d:], be1_ref[:, LANE + d:])

    # --- l1 + relu: blockwise aligned matmuls accumulate the K = 128+2D dot
    h = (jnp.dot(xn_deg, w1_ref[:LANE, :], preferred_element_type=jnp.float32)
         + jnp.dot(xn_u, w1_ref[LANE:LANE + d, :],
                   preferred_element_type=jnp.float32)
         + jnp.dot(xn_v, w1_ref[LANE + d:, :],
                   preferred_element_type=jnp.float32)
         + b1_ref[...])
    h = jnp.maximum(h, 0.0)

    # --- BN2 -> l2 -> relu (output lanes padded to 128; cols >= 2 stay 0)
    hn = _bn_train(h, g2_ref[...], be2_ref[...])
    o = jnp.dot(hn, w2_ref[...], preferred_element_type=jnp.float32) + b2_ref[...]
    out_ref[...] = jnp.maximum(o, 0.0)


def mlpbert_fused(pooled, deg_pad, prep, *, inv_s):
    # Single gridless call: all operands are tiny and live in VMEM.
    # TODO(synk): if batch ever scales (esp. v7x: 2 TCs, 64 MiB VMEM), tile B
    # with a parallel grid + split-stats BN (accumulate sum/sumsq, then norm).
    B = deg_pad.shape[0]
    D = pooled.shape[1]
    kernel = functools.partial(_fused_kernel, inv_s=inv_s, batch=B, d=D)
    vmem = pl.BlockSpec(memory_space=pltpu.MemorySpace.VMEM)
    return pl.pallas_call(
        kernel,
        out_shape=jax.ShapeDtypeStruct((B, OUT_PAD), jnp.float32),
        in_specs=[vmem] * 12,
        out_specs=vmem,
    )(pooled, deg_pad,
      prep["w_cls"], prep["b_cls"],
      prep["g1"], prep["be1"], prep["w1"], prep["b1"],
      prep["g2"], prep["be2"], prep["w2"], prep["b2"])


# ----------------------------------------------------------------------------
# Parameters (deterministic, in-script; PyTorch-style init)
# ----------------------------------------------------------------------------
def init_params(key, vocab_size, bert_num_feature, hidden_dim):
    mlp_input_dim = 3 + 2 * bert_num_feature
    ks = jax.random.split(key, 8)

    def lin(kw, kb, fan_in, fan_out):
        bound = 1.0 / jnp.sqrt(fan_in)
        w = jax.random.uniform(kw, (fan_in, fan_out), jnp.float32, -bound, bound)
        b = jax.random.uniform(kb, (1, fan_out), jnp.float32, -bound, bound)
        return w, b

    tok_emb = jax.random.normal(ks[0], (vocab_size, bert_num_feature),
                                jnp.float32) * 0.02
    w_cls, b_cls = lin(ks[1], ks[2], bert_num_feature, bert_num_feature)
    w1, b1 = lin(ks[3], ks[4], mlp_input_dim, hidden_dim)
    w2, b2 = lin(ks[5], ks[6], hidden_dim, 2)
    g1 = jnp.ones((1, mlp_input_dim), jnp.float32)
    be1 = jnp.zeros((1, mlp_input_dim), jnp.float32)
    g2 = jnp.ones((1, hidden_dim), jnp.float32)
    be2 = jnp.zeros((1, hidden_dim), jnp.float32)
    return dict(tok_emb=tok_emb, w_cls=w_cls, b_cls=b_cls,
                g1=g1, be1=be1, w1=w1, b1=b1,
                g2=g2, be2=be2, w2=w2, b2=b2)


def prepare_params(params):
    """Pad/permute params into the kernel's lane-aligned layout (done once).

    Feature layout: [deg (3) | zeros (125) | u_emb (D) | v_emb (D)].
    Pad columns get gamma=0, beta=0, zeroed w1 rows -> numerically inert.
    w2/b2 are padded to 128 output lanes with zeros.
    """
    D = params["w_cls"].shape[0]
    assert D % LANE == 0, "bert_num_feature must be a multiple of 128"

    def pad_cols(a):      # [1, 3+2D] -> [1, 128+2D]
        return jnp.concatenate(
            [jnp.pad(a[:, :3], ((0, 0), (0, LANE - 3))),
             a[:, 3:3 + D], a[:, 3 + D:]], axis=1)

    def pad_rows(w):      # [3+2D, H] -> [128+2D, H]
        return jnp.concatenate(
            [jnp.pad(w[:3], ((0, LANE - 3), (0, 0))),
             w[3:3 + D], w[3 + D:]], axis=0)

    w2p = jnp.pad(params["w2"], ((0, 0), (0, OUT_PAD - params["w2"].shape[1])))
    b2p = jnp.pad(params["b2"], ((0, 0), (0, OUT_PAD - params["b2"].shape[1])))
    return dict(w_cls=params["w_cls"], b_cls=params["b_cls"],
                g1=pad_cols(params["g1"]), be1=pad_cols(params["be1"]),
                w1=pad_rows(params["w1"]), b1=params["b1"],
                g2=params["g2"], be2=params["be2"], w2=w2p, b2=b2p)


# ----------------------------------------------------------------------------
# Forward pass (thin JAX glue around the single fused kernel)
# ----------------------------------------------------------------------------
def mlpbert_forward(params, prep, u_deg, v_deg, uv_deg_diff,
                    u_abstracts, v_abstracts, u_authors=None, v_authors=None):
    # u_authors / v_authors are unused, matching the original PyTorch forward.
    # TODO(synk): pretrained BERT encoder has no in-script equivalent;
    # replaced by token-embedding sum-pool (gather in glue) + dense+tanh in-kernel.
    B, S = u_abstracts.shape
    u_sum = jnp.sum(params["tok_emb"][u_abstracts], axis=1)      # [B, D]
    v_sum = jnp.sum(params["tok_emb"][v_abstracts], axis=1)      # [B, D]
    pooled = jnp.concatenate([u_sum, v_sum], axis=0)             # [2B, D]
    deg = jnp.concatenate([u_deg, v_deg, uv_deg_diff], axis=1)   # [B, 3]
    deg_pad = jnp.pad(deg, ((0, 0), (0, LANE - 3)))              # [B, 128]
    out_pad = mlpbert_fused(pooled, deg_pad, prep, inv_s=1.0 / S)
    return out_pad[:, :2]


def mlpbert_reference(params, u_deg, v_deg, uv_deg_diff,
                      u_abstracts, v_abstracts):
    # Pure-JAX ground truth in the ORIGINAL (unpadded, PyTorch-order) layout,
    # two-pass BatchNorm variance.
    def bn(x, g, b):
        m = jnp.mean(x, axis=0, keepdims=True)
        v = jnp.mean((x - m) ** 2, axis=0, keepdims=True)
        return (x - m) * jax.lax.rsqrt(v + BN_EPS) * g + b

    def enc(tokens):
        pooled = jnp.mean(params["tok_emb"][tokens], axis=1)
        return jnp.tanh(pooled @ params["w_cls"] + params["b_cls"])

    x = jnp.concatenate([u_deg, v_deg, uv_deg_diff,
                         enc(u_abstracts), enc(v_abstracts)], axis=1)
    h = jnp.maximum(bn(x, params["g1"], params["be1"]) @ params["w1"]
                    + params["b1"], 0.0)
    return jnp.maximum(bn(h, params["g2"], params["be2"]) @ params["w2"]
                       + params["b2"], 0.0)


# ----------------------------------------------------------------------------
if __name__ == "__main__":
    B = 8          # batch
    SEQ = 16       # abstract token length
    VOCAB = 64     # stand-in vocab
    BERT_FEAT = 128  # bert_num_feature (small for test; 768 also works)
    HIDDEN = 128   # hidden_dim

    key = jax.random.PRNGKey(0)
    k_par, k_ud, k_vd, k_ua, k_va = jax.random.split(key, 5)

    params = init_params(k_par, VOCAB, BERT_FEAT, HIDDEN)
    prep = prepare_params(params)   # one-time padded/permuted kernel layout

    u_deg = jax.random.uniform(k_ud, (B, 1), jnp.float32, 0.0, 10.0)
    v_deg = jax.random.uniform(k_vd, (B, 1), jnp.float32, 0.0, 10.0)
    uv_deg_diff = u_deg - v_deg
    u_abstracts = jax.random.randint(k_ua, (B, SEQ), 0, VOCAB, jnp.int32)
    v_abstracts = jax.random.randint(k_va, (B, SEQ), 0, VOCAB, jnp.int32)

    fwd = jax.jit(mlpbert_forward)
    out = fwd(params, prep, u_deg, v_deg, uv_deg_diff, u_abstracts, v_abstracts)
    out = jax.block_until_ready(out)

    ref = mlpbert_reference(params, u_deg, v_deg, uv_deg_diff,
                            u_abstracts, v_abstracts)
    assert out.shape == (B, 2), out.shape
    assert jnp.allclose(out, ref, atol=1e-4, rtol=1e-4), \
        f"mismatch: max abs err {jnp.max(jnp.abs(out - ref))}"

    print("KERNEL_OK")
</pallas_src>

<mosaic_0001>
module attributes {stable_mosaic.version = 11 : i64} {
  func.func @_fused_kernel(%arg0: memref<16x128xf32, #tpu.memory_space<vmem>>, %arg1: memref<8x128xf32, #tpu.memory_space<vmem>>, %arg2: memref<128x128xf32, #tpu.memory_space<vmem>>, %arg3: memref<1x128xf32, #tpu.memory_space<vmem>>, %arg4: memref<1x384xf32, #tpu.memory_space<vmem>>, %arg5: memref<1x384xf32, #tpu.memory_space<vmem>>, %arg6: memref<384x128xf32, #tpu.memory_space<vmem>>, %arg7: memref<1x128xf32, #tpu.memory_space<vmem>>, %arg8: memref<1x128xf32, #tpu.memory_space<vmem>>, %arg9: memref<1x128xf32, #tpu.memory_space<vmem>>, %arg10: memref<128x128xf32, #tpu.memory_space<vmem>>, %arg11: memref<1x128xf32, #tpu.memory_space<vmem>>, %arg12: memref<8x128xf32, #tpu.memory_space<vmem>>) attributes {dimension_semantics = [], scalar_prefetch = 0 : i64, scratch_operands = 0 : i64, tpu.core_type = #tpu.core_type<tc>} {
    %c0 = arith.constant 0 : index
    %c0_0 = arith.constant 0 : index
    %0 = vector.load %arg0[%c0, %c0_0] : memref<16x128xf32, #tpu.memory_space<vmem>>, vector<16x128xf32>
    %cst = arith.constant 6.250000e-02 : f32
    %1 = vector.broadcast %cst : f32 to vector<16x128xf32>
    %2 = arith.mulf %0, %1 : vector<16x128xf32>
    %c0_1 = arith.constant 0 : index
    %c0_2 = arith.constant 0 : index
    %3 = vector.load %arg2[%c0_1, %c0_2] : memref<128x128xf32, #tpu.memory_space<vmem>>, vector<128x128xf32>
    %cst_3 = arith.constant dense<0.000000e+00> : vector<16x128xf32>
    %4 = tpu.matmul %2, %3, %cst_3 {dimension_numbers = #tpu.dot_dimension_numbers<[1], [0], [0], [1], [0, 0, 1, 1], [], []>} : vector<16x128xf32>, vector<128x128xf32>, vector<16x128xf32> -> vector<16x128xf32>
    %c0_4 = arith.constant 0 : index
    %c0_5 = arith.constant 0 : index
    %5 = vector.load %arg3[%c0_4, %c0_5] : memref<1x128xf32, #tpu.memory_space<vmem>>, vector<1x128xf32>
    %6 = vector.broadcast %5 : vector<1x128xf32> to vector<16x128xf32>
    %7 = arith.addf %4, %6 : vector<16x128xf32>
    %8 = math.tanh %7 : vector<16x128xf32>
    %9 = vector.extract_strided_slice %8 {offsets = [0, 0], sizes = [8, 128], strides = [1, 1]} : vector<16x128xf32> to vector<8x128xf32>
    %10 = vector.extract_strided_slice %8 {offsets = [8, 0], sizes = [8, 128], strides = [1, 1]} : vector<16x128xf32> to vector<8x128xf32>
    %c0_6 = arith.constant 0 : index
    %c0_7 = arith.constant 0 : index
    %11 = vector.load %arg1[%c0_6, %c0_7] : memref<8x128xf32, #tpu.memory_space<vmem>>, vector<8x128xf32>
    %c0_8 = arith.constant 0 : index
    %c0_9 = arith.constant 0 : index
    %12 = vector.load %arg4[%c0_8, %c0_9] : memref<1x384xf32, #tpu.memory_space<vmem>>, vector<1x128xf32>
    %c0_10 = arith.constant 0 : index
    %c0_11 = arith.constant 0 : index
    %13 = vector.load %arg5[%c0_10, %c0_11] : memref<1x384xf32, #tpu.memory_space<vmem>>, vector<1x128xf32>
    %cst_12 = arith.constant dense<0.000000e+00> : vector<128xf32>
    %14 = vector.multi_reduction <add>, %11, %cst_12 [0] : vector<8x128xf32> to vector<128xf32>
    %15 = vector.shape_cast %14 : vector<128xf32> to vector<1x128xf32>
    %cst_13 = arith.constant 8.000000e+00 : f32
    %16 = vector.broadcast %cst_13 : f32 to vector<1x128xf32>
    %17 = arith.divf %15, %16 : vector<1x128xf32>
    %18 = arith.mulf %11, %11 : vector<8x128xf32>
    %cst_14 = arith.constant dense<0.000000e+00> : vector<128xf32>
    %19 = vector.multi_reduction <add>, %18, %cst_14 [0] : vector<8x128xf32> to vector<128xf32>
    %20 = vector.shape_cast %19 : vector<128xf32> to vector<1x128xf32>
    %cst_15 = arith.constant 8.000000e+00 : f32
    %21 = vector.broadcast %cst_15 : f32 to vector<1x128xf32>
    %22 = arith.divf %20, %21 : vector<1x128xf32>
    %23 = arith.mulf %17, %17 : vector<1x128xf32>
    %24 = arith.subf %22, %23 : vector<1x128xf32>
    %cst_16 = arith.constant 0.000000e+00 : f32
    %25 = vector.broadcast %cst_16 : f32 to vector<1x128xf32>
    %26 = arith.maximumf %24, %25 : vector<1x128xf32>
    %27 = vector.broadcast %17 : vector<1x128xf32> to vector<8x128xf32>
    %28 = arith.subf %11, %27 : vector<8x128xf32>
    %cst_17 = arith.constant 9.99999974E-6 : f32
    %29 = vector.broadcast %cst_17 : f32 to vector<1x128xf32>
    %30 = arith.addf %26, %29 : vector<1x128xf32>
    %31 = math.rsqrt %30 : vector<1x128xf32>
    %32 = vector.broadcast %31 : vector<1x128xf32> to vector<8x128xf32>
    %33 = arith.mulf %28, %32 : vector<8x128xf32>
    %34 = vector.broadcast %12 : vector<1x128xf32> to vector<8x128xf32>
    %35 = arith.mulf %33, %34 : vector<8x128xf32>
    %36 = vector.broadcast %13 : vector<1x128xf32> to vector<8x128xf32>
    %37 = arith.addf %35, %36 : vector<8x128xf32>
    %c0_18 = arith.constant 0 : index
    %c128 = arith.constant 128 : index
    %38 = vector.load %arg4[%c0_18, %c128] : memref<1x384xf32, #tpu.memory_space<vmem>>, vector<1x128xf32>
    %c0_19 = arith.constant 0 : index
    %c128_20 = arith.constant 128 : index
    %39 = vector.load %arg5[%c0_19, %c128_20] : memref<1x384xf32, #tpu.memory_space<vmem>>, vector<1x128xf32>
    %cst_21 = arith.constant dense<0.000000e+00> : vector<128xf32>
    %40 = vector.multi_reduction <add>, %9, %cst_21 [0] : vector<8x128xf32> to vector<128xf32>
    %41 = vector.shape_cast %40 : vector<128xf32> to vector<1x128xf32>
    %cst_22 = arith.constant 8.000000e+00 : f32
    %42 = vector.broadcast %cst_22 : f32 to vector<1x128xf32>
    %43 = arith.divf %41, %42 : vector<1x128xf32>
    %44 = arith.mulf %9, %9 : vector<8x128xf32>
    %cst_23 = arith.constant dense<0.000000e+00> : vector<128xf32>
    %45 = vector.multi_reduction <add>, %44, %cst_23 [0] : vector<8x128xf32> to vector<128xf32>
    %46 = vector.shape_cast %45 : vector<128xf32> to vector<1x128xf32>
    %cst_24 = arith.constant 8.000000e+00 : f32
    %47 = vector.broadcast %cst_24 : f32 to vector<1x128xf32>
    %48 = arith.divf %46, %47 : vector<1x128xf32>
    %49 = arith.mulf %43, %43 : vector<1x128xf32>
    %50 = arith.subf %48, %49 : vector<1x128xf32>
    %cst_25 = arith.constant 0.000000e+00 : f32
    %51 = vector.broadcast %cst_25 : f32 to vector<1x128xf32>
    %52 = arith.maximumf %50, %51 : vector<1x128xf32>
    %53 = vector.broadcast %43 : vector<1x128xf32> to vector<8x128xf32>
    %54 = arith.subf %9, %53 : vector<8x128xf32>
    %cst_26 = arith.constant 9.99999974E-6 : f32
    %55 = vector.broadcast %cst_26 : f32 to vector<1x128xf32>
    %56 = arith.addf %52, %55 : vector<1x128xf32>
    %57 = math.rsqrt %56 : vector<1x128xf32>
    %58 = vector.broadcast %57 : vector<1x128xf32> to vector<8x128xf32>
    %59 = arith.mulf %54, %58 : vector<8x128xf32>
    %60 = vector.broadcast %38 : vector<1x128xf32> to vector<8x128xf32>
    %61 = arith.mulf %59, %60 : vector<8x128xf32>
    %62 = vector.broadcast %39 : vector<1x128xf32> to vector<8x128xf32>
    %63 = arith.addf %61, %62 : vector<8x128xf32>
    %c0_27 = arith.constant 0 : index
    %c256 = arith.constant 256 : index
    %64 = vector.load %arg4[%c0_27, %c256] : memref<1x384xf32, #tpu.memory_space<vmem>>, vector<1x128xf32>
    %c0_28 = arith.constant 0 : index
    %c256_29 = arith.constant 256 : index
    %65 = vector.load %arg5[%c0_28, %c256_29] : memref<1x384xf32, #tpu.memory_space<vmem>>, vector<1x128xf32>
    %cst_30 = arith.constant dense<0.000000e+00> : vector<128xf32>
    %66 = vector.multi_reduction <add>, %10, %cst_30 [0] : vector<8x128xf32> to vector<128xf32>
    %67 = vector.shape_cast %66 : vector<128xf32> to vector<1x128xf32>
    %cst_31 = arith.constant 8.000000e+00 : f32
    %68 = vector.broadcast %cst_31 : f32 to vector<1x128xf32>
    %69 = arith.divf %67, %68 : vector<1x128xf32>
    %70 = arith.mulf %10, %10 : vector<8x128xf32>
    %cst_32 = arith.constant dense<0.000000e+00> : vector<128xf32>
    %71 = vector.multi_reduction <add>, %70, %cst_32 [0] : vector<8x128xf32> to vector<128xf32>
    %72 = vector.shape_cast %71 : vector<128xf32> to vector<1x128xf32>
    %cst_33 = arith.constant 8.000000e+00 : f32
    %73 = vector.broadcast %cst_33 : f32 to vector<1x128xf32>
    %74 = arith.divf %72, %73 : vector<1x128xf32>
    %75 = arith.mulf %69, %69 : vector<1x128xf32>
    %76 = arith.subf %74, %75 : vector<1x128xf32>
    %cst_34 = arith.constant 0.000000e+00 : f32
    %77 = vector.broadcast %cst_34 : f32 to vector<1x128xf32>
    %78 = arith.maximumf %76, %77 : vector<1x128xf32>
    %79 = vector.broadcast %69 : vector<1x128xf32> to vector<8x128xf32>
    %80 = arith.subf %10, %79 : vector<8x128xf32>
    %cst_35 = arith.constant 9.99999974E-6 : f32
    %81 = vector.broadcast %cst_35 : f32 to vector<1x128xf32>
    %82 = arith.addf %78, %81 : vector<1x128xf32>
    %83 = math.rsqrt %82 : vector<1x128xf32>
    %84 = vector.broadcast %83 : vector<1x128xf32> to vector<8x128xf32>
    %85 = arith.mulf %80, %84 : vector<8x128xf32>
    %86 = vector.broadcast %64 : vector<1x128xf32> to vector<8x128xf32>
    %87 = arith.mulf %85, %86 : vector<8x128xf32>
    %88 = vector.broadcast %65 : vector<1x128xf32> to vector<8x128xf32>
    %89 = arith.addf %87, %88 : vector<8x128xf32>
    %c0_36 = arith.constant 0 : index
    %c0_37 = arith.constant 0 : index
    %90 = vector.load %arg6[%c0_36, %c0_37] : memref<384x128xf32, #tpu.memory_space<vmem>>, vector<128x128xf32>
    %cst_38 = arith.constant dense<0.000000e+00> : vector<8x128xf32>
    %91 = tpu.matmul %37, %90, %cst_38 {dimension_numbers = #tpu.dot_dimension_numbers<[1], [0], [0], [1], [0, 0, 1, 1], [], []>} : vector<8x128xf32>, vector<128x128xf32>, vector<8x128xf32> -> vector<8x128xf32>
    %c128_39 = arith.constant 128 : index
    %c0_40 = arith.constant 0 : index
    %92 = vector.load %arg6[%c128_39, %c0_40] : memref<384x128xf32, #tpu.memory_space<vmem>>, vector<128x128xf32>
    %cst_41 = arith.constant dense<0.000000e+00> : vector<8x128xf32>
    %93 = tpu.matmul %63, %92, %cst_41 {dimension_numbers = #tpu.dot_dimension_numbers<[1], [0], [0], [1], [0, 0, 1, 1], [], []>} : vector<8x128xf32>, vector<128x128xf32>, vector<8x128xf32> -> vector<8x128xf32>
    %94 = arith.addf %91, %93 : vector<8x128xf32>
    %c256_42 = arith.constant 256 : index
    %c0_43 = arith.constant 0 : index
    %95 = vector.load %arg6[%c256_42, %c0_43] : memref<384x128xf32, #tpu.memory_space<vmem>>, vector<128x128xf32>
    %cst_44 = arith.constant dense<0.000000e+00> : vector<8x128xf32>
    %96 = tpu.matmul %89, %95, %cst_44 {dimension_numbers = #tpu.dot_dimension_numbers<[1], [0], [0], [1], [0, 0, 1, 1], [], []>} : vector<8x128xf32>, vector<128x128xf32>, vector<8x128xf32> -> vector<8x128xf32>
    %97 = arith.addf %94, %96 : vector<8x128xf32>
    %c0_45 = arith.constant 0 : index
    %c0_46 = arith.constant 0 : index
    %98 = vector.load %arg7[%c0_45, %c0_46] : memref<1x128xf32, #tpu.memory_space<vmem>>, vector<1x128xf32>
    %99 = vector.broadcast %98 : vector<1x128xf32> to vector<8x128xf32>
    %100 = arith.addf %97, %99 : vector<8x128xf32>
    %cst_47 = arith.constant 0.000000e+00 : f32
    %101 = vector.broadcast %cst_47 : f32 to vector<8x128xf32>
    %102 = arith.maximumf %100, %101 : vector<8x128xf32>
    %c0_48 = arith.constant 0 : index
    %c0_49 = arith.constant 0 : index
    %103 = vector.load %arg8[%c0_48, %c0_49] : memref<1x128xf32, #tpu.memory_space<vmem>>, vector<1x128xf32>
    %c0_50 = arith.constant 0 : index
    %c0_51 = arith.constant 0 : index
    %104 = vector.load %arg9[%c0_50, %c0_51] : memref<1x128xf32, #tpu.memory_space<vmem>>, vector<1x128xf32>
    %cst_52 = arith.constant dense<0.000000e+00> : vector<128xf32>
    %105 = vector.multi_reduction <add>, %102, %cst_52 [0] : vector<8x128xf32> to vector<128xf32>
    %106 = vector.shape_cast %105 : vector<128xf32> to vector<1x128xf32>
    %cst_53 = arith.constant 8.000000e+00 : f32
    %107 = vector.broadcast %cst_53 : f32 to vector<1x128xf32>
    %108 = arith.divf %106, %107 : vector<1x128xf32>
    %109 = arith.mulf %102, %102 : vector<8x128xf32>
    %cst_54 = arith.constant dense<0.000000e+00> : vector<128xf32>
    %110 = vector.multi_reduction <add>, %109, %cst_54 [0] : vector<8x128xf32> to vector<128xf32>
    %111 = vector.shape_cast %110 : vector<128xf32> to vector<1x128xf32>
    %cst_55 = arith.constant 8.000000e+00 : f32
    %112 = vector.broadcast %cst_55 : f32 to vector<1x128xf32>
    %113 = arith.divf %111, %112 : vector<1x128xf32>
    %114 = arith.mulf %108, %108 : vector<1x128xf32>
    %115 = arith.subf %113, %114 : vector<1x128xf32>
    %cst_56 = arith.constant 0.000000e+00 : f32
    %116 = vector.broadcast %cst_56 : f32 to vector<1x128xf32>
    %117 = arith.maximumf %115, %116 : vector<1x128xf32>
    %118 = vector.broadcast %108 : vector<1x128xf32> to vector<8x128xf32>
    %119 = arith.subf %102, %118 : vector<8x128xf32>
    %cst_57 = arith.constant 9.99999974E-6 : f32
    %120 = vector.broadcast %cst_57 : f32 to vector<1x128xf32>
    %121 = arith.addf %117, %120 : vector<1x128xf32>
    %122 = math.rsqrt %121 : vector<1x128xf32>
    %123 = vector.broadcast %122 : vector<1x128xf32> to vector<8x128xf32>
    %124 = arith.mulf %119, %123 : vector<8x128xf32>
    %125 = vector.broadcast %103 : vector<1x128xf32> to vector<8x128xf32>
    %126 = arith.mulf %124, %125 : vector<8x128xf32>
    %127 = vector.broadcast %104 : vector<1x128xf32> to vector<8x128xf32>
    %128 = arith.addf %126, %127 : vector<8x128xf32>
    %c0_58 = arith.constant 0 : index
    %c0_59 = arith.constant 0 : index
    %129 = vector.load %arg10[%c0_58, %c0_59] : memref<128x128xf32, #tpu.memory_space<vmem>>, vector<128x128xf32>
    %cst_60 = arith.constant dense<0.000000e+00> : vector<8x128xf32>
    %130 = tpu.matmul %128, %129, %cst_60 {dimension_numbers = #tpu.dot_dimension_numbers<[1], [0], [0], [1], [0, 0, 1, 1], [], []>} : vector<8x128xf32>, vector<128x128xf32>, vector<8x128xf32> -> vector<8x128xf32>
    %c0_61 = arith.constant 0 : index
    %c0_62 = arith.constant 0 : index
    %131 = vector.load %arg11[%c0_61, %c0_62] : memref<1x128xf32, #tpu.memory_space<vmem>>, vector<1x128xf32>
    %132 = vector.broadcast %131 : vector<1x128xf32> to vector<8x128xf32>
    %133 = arith.addf %130, %132 : vector<8x128xf32>
    %cst_63 = arith.constant 0.000000e+00 : f32
    %134 = vector.broadcast %cst_63 : f32 to vector<8x128xf32>
    %135 = arith.maximumf %133, %134 : vector<8x128xf32>
    %c0_64 = arith.constant 0 : index
    %c0_65 = arith.constant 0 : index
    %136 = vector.load %arg12[%c0_64, %c0_65] : memref<8x128xf32, #tpu.memory_space<vmem>>, vector<8x128xf32>
    tpu.vector_store %arg12[%c0_64, %c0_65], %135 {strides = array<i32>} : memref<8x128xf32, #tpu.memory_space<vmem>>, vector<8x128xf32>,
    return
  }
}

</mosaic_0001>

<bundles_post_ra>
// kernel: mlpbert_forward.1
= control target key start
LH: loop header
LB: loop body
LE: loop exit
PB: predicated region body
PF: predicated region fallthrough
CT: control target
= control target key end

     0   :  { %v449_v20 = vmov 8.0   ;;  %s836_s2 = inlined_call_operand.vmem [shape: f32[128,128], index: 2, kind: input, shape index: {}]   ;;  %s837_s3 = inlined_call_operand.vmem [shape: f32[1,128], index: 3, kind: input, shape index: {}]   ;;  %s838_s0 = inlined_call_operand.vmem [shape: f32[16,128], index: 0, kind: input, shape index: {}]   ;;  %s839_s4 = inlined_call_operand.vmem [shape: f32[1,384], index: 4, kind: input, shape index: {}]   ;;  %s840_s5 = inlined_call_operand.vmem [shape: f32[1,384], index: 5, kind: input, shape index: {}]   ;;  %s841_s1 = inlined_call_operand.vmem [shape: f32[8,128], index: 1, kind: input, shape index: {}]   ;;  %s842_s6 = inlined_call_operand.vmem [shape: f32[384,128], index: 6, kind: input, shape index: {}]   ;;  %s843_s7 = inlined_call_operand.vmem [shape: f32[1,128], index: 7, kind: input, shape index: {}]   ;;  %s844_s8 = inlined_call_operand.vmem [shape: f32[1,128], index: 8, kind: input, shape index: {}]   ;;  %s845_s9 = inlined_call_operand.vmem [shape: f32[1,128], index: 9, kind: input, shape index: {}]   ;;  %s846_s11 = inlined_call_operand.vmem [shape: f32[1,128], index: 11, kind: input, shape index: {}]   ;;  %s847_s10 = inlined_call_operand.vmem [shape: f32[128,128], index: 10, kind: input, shape index: {}]   ;;  %s848_s12 = inlined_call_operand.vmem [shape: f32[8,128], index: 12, kind: output, shape index: {}]  }
   0x1   :  { %v60_v0 = vld [vmem:[%s836_s2 + $0x78] sm:$0xff]  ;;  %v59_v1 = vld [vmem:[%s836_s2 + $0x70] sm:$0xff]  ;;  %v58_v2 = vld [vmem:[%s836_s2 + $0x68] sm:$0xff]  ;;  %435 = vrcp.f32 %v449_v20 }
   0x2   :  { %65 = vmatpush.msra.mxu0 %v60_v0  ;;  %v57_v3 = vld [vmem:[%s836_s2 + $0x60] sm:$0xff]  ;;  %v56_v4 = vld [vmem:[%s836_s2 + $0x58] sm:$0xff]  ;;  %v55_v5 = vld [vmem:[%s836_s2 + $0x50] sm:$0xff] }
   0x3   :  { %v54_v6 = vld [vmem:[%s836_s2 + $0x48] sm:$0xff]  ;;  %v53_v7 = vld [vmem:[%s836_s2 + $0x40] sm:$0xff]  ;;  %v52_v8 = vld [vmem:[%s836_s2 + $0x38] sm:$0xff] }
   0x4   :  { %66 = vmatpush.msra.mxu0 %v59_v1  ;;  %v51_v9 = vld [vmem:[%s836_s2 + $0x30] sm:$0xff]  ;;  %v50_v10 = vld [vmem:[%s836_s2 + $0x28] sm:$0xff]  ;;  %v49_v11 = vld [vmem:[%s836_s2 + $0x20] sm:$0xff] }
   0x5   :  { %v48_v12 = vld [vmem:[%s836_s2 + $0x18] sm:$0xff]  ;;  %v47_v13 = vld [vmem:[%s836_s2 + $0x10] sm:$0xff]  ;;  %v41_v14 = vld [vmem:[%s838_s0] sm:$0xff] }
   0x6   :  { %67 = vmatpush.msra.mxu0 %v58_v2  ;;  %v46_v15 = vld [vmem:[%s836_s2 + $0x8] sm:$0xff]  ;;  %v45_v16 = vld [vmem:[%s836_s2] sm:$0xff]  ;;  %v43_v17 = vmul.f32 0.0625, %v41_v14  ;;  %v236_v33 = vld [vmem:[%s842_s6 + $0x78] sm:$0xff] }
   0x7   :  { %v42_v18 = vld [vmem:[%s838_s0 + $0x8] sm:$0xff]  ;;  %v572_v21 = vld [vmem:[%s841_s1] sm:$0xff]  ;;  %v436_v24 = vpop.eup %435  ;;  %v235_v34 = vld [vmem:[%s842_s6 + $0x70] sm:$0xff]  ;;  %273 = vmatpush.msra.mxu2 %v236_v33 }
   0x8   :  { %68 = vmatpush.msra.mxu0 %v57_v3  ;;  %v44_v19 = vmul.f32 0.0625, %v42_v18  ;;  %v93_v22 = vrot.slane %v572_v21, 4  ;;  %v107_v23 = vmul.f32 %v572_v21, %v572_v21  ;;  %v100_v27 = vmul.f32 8.0, %v436_v24  ;;  %v252_v36 = vld [vmem:[%s842_s6 + $0xf8] sm:$0xff]  ;;  %v251_v37 = vld [vmem:[%s842_s6 + $0xf0] sm:$0xff]  ;;  %v234_v40 = vld [vmem:[%s842_s6 + $0x68] sm:$0xff] }
   0x9   :  { %vm104_vm0 = vweird.f32 %v436_v24  ;;  %253 = vmatpush.msra.mxu1 %v252_v36  ;;  %274 = vmatpush.msra.mxu2 %v235_v34  ;;  %v250_v42 = vld [vmem:[%s842_s6 + $0xe8] sm:$0xff]  ;;  %v233_v45 = vld [vmem:[%s842_s6 + $0x60] sm:$0xff]  ;;  %v308_v46 = vld [vmem:[%s842_s6 + $0x178] sm:$0xff] }
   0xa   :  { %69 = vmatpush.msra.mxu0 %v56_v4  ;;  %v94_v25 = vadd.f32 %v93_v22, %v572_v21  ;;  %v108_v26 = vrot.slane %v107_v23, 4  ;;  %v101_v30 = vsub.f32 1.0, %v100_v27  ;;  %v249_v48 = vld [vmem:[%s842_s6 + $0xe0] sm:$0xff]  ;;  %309 = vmatpush.msra.mxu3 %v308_v46  ;;  %v307_v49 = vld [vmem:[%s842_s6 + $0x170] sm:$0xff]  ;;  %v232_v52 = vld [vmem:[%s842_s6 + $0x58] sm:$0xff] }
   0xb   :  { %254 = vmatpush.msra.mxu1 %v251_v37  ;;  %275 = vmatpush.msra.mxu2 %v234_v40  ;;  %v306_v53 = vld [vmem:[%s842_s6 + $0x168] sm:$0xff]  ;;  %v248_v54 = vld [vmem:[%s842_s6 + $0xd8] sm:$0xff]  ;;  %v231_v57 = vld [vmem:[%s842_s6 + $0x50] sm:$0xff] }
   0xc   :  { %70 = vmatpush.msra.mxu0 %v55_v5  ;;  %v95_v28 = vrot.slane %v94_v25, 2  ;;  %v109_v29 = vadd.f32 %v108_v26, %v107_v23  ;;  %v102_v35 = vmul.f32 %v436_v24, %v101_v30  ;;  %310 = vmatpush.msra.mxu3 %v307_v49  ;;  %v305_v58 = vld [vmem:[%s842_s6 + $0x160] sm:$0xff]  ;;  %v247_v59 = vld [vmem:[%s842_s6 + $0xd0] sm:$0xff]  ;;  %v230_v61 = vld [vmem:[%s842_s6 + $0x48] sm:$0xff] }
   0xd   :  { %255 = vmatpush.msra.mxu1 %v250_v42  ;;  %276 = vmatpush.msra.mxu2 %v233_v45  ;;  %v304_v62 = vld [vmem:[%s842_s6 + $0x158] sm:$0xff]  ;;  %v246_v63 = vld [vmem:[%s842_s6 + $0xc8] sm:$0xff]  ;;  %v229_v1 = vld [vmem:[%s842_s6 + $0x40] sm:$0xff] }
   0xe   :  { %71 = vmatpush.msra.mxu0 %v54_v6  ;;  %v96_v31 = vadd.f32 %v95_v28, %v94_v25  ;;  %v110_v32 = vrot.slane %v109_v29, 2  ;;  %v103_v41 = vadd.f32 %v436_v24, %v102_v35  ;;  %311 = vmatpush.msra.mxu3 %v306_v53  ;;  %v303_v2 = vld [vmem:[%s842_s6 + $0x150] sm:$0xff]  ;;  %v245_v3 = vld [vmem:[%s842_s6 + $0xc0] sm:$0xff]  ;;  %v228_v5 = vld [vmem:[%s842_s6 + $0x38] sm:$0xff] }
   0xf   :  { %256 = vmatpush.msra.mxu1 %v249_v48  ;;  %277 = vmatpush.msra.mxu2 %v232_v52  ;;  %v302_v6 = vld [vmem:[%s842_s6 + $0x148] sm:$0xff]  ;;  %v224_v22 = vld [vmem:[%s842_s6 + $0x18] sm:$0xff]  ;;  %v223_v26 = vld [vmem:[%s842_s6 + $0x10] sm:$0xff] }
  0x10   :  { %72 = vmatpush.msra.mxu0 %v53_v7  ;;  %v97_v38 = vrot.slane %v96_v31, 1  ;;  %v111_v39 = vadd.f32 %v110_v32, %v109_v29  ;;  %v602_v47 = vsel %vm104_vm0, %v436_v24, %v103_v41  ;;  %312 = vmatpush.msra.mxu3 %v305_v58  ;;  %v244_v7 = vld [vmem:[%s842_s6 + $0xb8] sm:$0xff]  ;;  %v242_v14 = vld [vmem:[%s842_s6 + $0xa8] sm:$0xff]  ;;  %v297_v28 = vld [vmem:[%s842_s6 + $0x120] sm:$0xff] }
  0x11   :  { %257 = vmatpush.msra.mxu1 %v248_v54  ;;  %278 = vmatpush.msra.mxu2 %v231_v57  ;;  %v298_v24 = vld [vmem:[%s842_s6 + $0x128] sm:$0xff]  ;;  %v240_v25 = vld [vmem:[%s842_s6 + $0x98] sm:$0xff]  ;;  %v239_v29 = vld [vmem:[%s842_s6 + $0x90] sm:$0xff] }
  0x12   :  { %73 = vmatpush.msra.mxu0 %v52_v8  ;;  %v98_v43 = vadd.f32 %v97_v38, %v96_v31  ;;  %v112_v44 = vrot.slane %v111_v39, 1  ;;  %313 = vmatpush.msra.mxu3 %v304_v62  ;;  %v227_v8 = vld [vmem:[%s842_s6 + $0x30] sm:$0xff]  ;;  %v222_v30 = vld [vmem:[%s842_s6 + $0x8] sm:$0xff]  ;;  %v221_v33 = vld [vmem:[%s842_s6] sm:$0xff] }
  0x13   :  { %258 = vmatpush.msra.mxu1 %v247_v59  ;;  %279 = vmatpush.msra.mxu2 %v230_v61  ;;  %v238_v32 = vld [vmem:[%s842_s6 + $0x88] sm:$0xff]  ;;  %v237_v37 = vld [vmem:[%s842_s6 + $0x80] sm:$0xff] }
  0x14   :  { %74 = vmatpush.msra.mxu0 %v51_v9  ;;  %v611_v50 = vmul.f32 %v602_v47, %v98_v43  ;;  %v113_v51 = vadd.f32 %v112_v44, %v111_v39  ;;  %314 = vmatpush.msra.mxu3 %v303_v2  ;;  %v301_v9 = vld [vmem:[%s842_s6 + $0x140] sm:$0xff] }
  0x15   :  { %259 = vmatpush.msra.mxu1 %v246_v63  ;;  %280 = vmatpush.msra.mxu2 %v229_v1  ;;  %v425_v41 = vld [vmem:[%s839_s4] ss:$0 sm:$0xff] }
  0x16   :  { %75 = vmatpush.msra.mxu0 %v50_v10  ;;  %v114_v55 = vmul.f32 %v113_v51, %v602_v47  ;;  %v115_v56 = vmul.f32 %v611_v50, %v611_v50  ;;  %v243_v10 = vld [vmem:[%s842_s6 + $0xb0] sm:$0xff]  ;;  %315 = vmatpush.msra.mxu3 %v302_v6  ;;  %v118_v36 = vsub.f32 %v572_v21, %v611_v50  ;;  %v426_v45 = vld [vmem:[%s840_s5] ss:$0 sm:$0xff]  ;;  %v296_v6 = vld [vmem:[%s842_s6 + $0x118] sm:$0xff] }
  0x17   :  { %260 = vmatpush.msra.mxu1 %v245_v3  ;;  %281 = vmatpush.msra.mxu2 %v228_v5 }
  0x18   :  { %76 = vmatpush.msra.mxu0 %v49_v11  ;;  %v116_v60 = vsub.f32 %v114_v55, %v115_v56  ;;  %v424_v11 = vld [vmem:[%s837_s3] ss:$0 sm:$0xff]  ;;  %316 = vmatpush.msra.mxu3 %v301_v9 }
  0x19   :  { %261 = vmatpush.msra.mxu1 %v244_v7  ;;  %282 = vmatpush.msra.mxu2 %v227_v8  ;;  %v295_v7 = vld [vmem:[%s842_s6 + $0x110] sm:$0xff] }
  0x1a   :  { %77 = vmatpush.msra.mxu0 %v48_v12  ;;  %v117_v0 = vmax.f32 %v116_v60, 0.0  ;;  %v226_v12 = vld [vmem:[%s842_s6 + $0x28] sm:$0xff] }
  0x1b   :  { %262 = vmatpush.msra.mxu1 %v243_v10  ;;  %283 = vmatpush.msra.mxu2 %v226_v12 }
  0x1c   :  { %78 = vmatpush.msra.mxu0 %v47_v13  ;;  %v119_v4 = vadd.f32 1e-05, %v117_v0  ;;  %v300_v13 = vld [vmem:[%s842_s6 + $0x138] sm:$0xff] }
  0x1d   :  { %317 = vmatpush.msra.mxu3 %v300_v13  ;;  %263 = vmatpush.msra.mxu1 %v242_v14 }
  0x1e   :  { %79 = vmatpush.msra.mxu0 %v46_v15  ;;  %437 = vrsqrt.f32 %v119_v4  ;;  %v225_v15 = vld [vmem:[%s842_s6 + $0x20] sm:$0xff]  ;;  %vm126_vm1 = vweird.f32 %v119_v4 }
  0x1f   :  { %284 = vmatpush.msra.mxu2 %v225_v15  ;;  %v293_v15 = vld [vmem:[%s842_s6 + $0x100] sm:$0xff] }
  0x20   :  { %80 = vmatpush.msra.mxu0 %v45_v16  ;;  %v299_v16 = vld [vmem:[%s842_s6 + $0x130] sm:$0xff] }
  0x21   :  { %81 = vmatmul.f32.vlgmr.msra.gmra.mxu0 %v43_v17  ;;  %318 = vmatpush.msra.mxu3 %v299_v16 }
  0x22   :  { %285 = vmatpush.msra.mxu2 %v224_v22 }
  0x23   :  { %319 = vmatpush.msra.mxu3 %v298_v24 }
  0x24   :  { %v438_v17 = vpop.eup %437  ;;  %286 = vmatpush.msra.mxu2 %v223_v26 }
  0x25   :  { %v121_v23 = vmul.f32 %v438_v17, %v119_v4  ;;  %vm127_vm2 = vweird.f32 %v438_v17  ;;  %320 = vmatpush.msra.mxu3 %v297_v28 }
  0x26   :  { %287 = vmatpush.msra.mxu2 %v222_v30  ;;  %vm128_vm3 = vmor %vm126_vm1, %vm127_vm2 }
  0x27   :  { %v122_v27 = vmul.f32 %v438_v17, %v121_v23  ;;  %321 = vmatpush.msra.mxu3 %v296_v6 }
  0x28   :  { %288 = vmatpush.msra.mxu2 %v221_v33 }
  0x29   :  { %84 = vmatmul.f32.gmra.mxu0 %v44_v19  ;;  %v241_v19 = vld [vmem:[%s842_s6 + $0xa0] sm:$0xff]  ;;  %v123_v31 = vmul.f32 0.5, %v122_v27  ;;  %322 = vmatpush.msra.mxu3 %v295_v7  ;;  %v382_v7 = vld [vmem:[%s847_s10 + $0x28] sm:$0xff] }
  0x2a   :  { %264 = vmatpush.msra.mxu1 %v241_v19 }
  0x2b   :  { %v124_v34 = vsub.f32 1.5, %v123_v31 }
  0x2c   :  { %265 = vmatpush.msra.mxu1 %v240_v25 }
  0x2d   :  { %v125_v40 = vmul.f32 %v438_v17, %v124_v34 }
  0x2e   :  { %266 = vmatpush.msra.mxu1 %v239_v29 }
  0x2f   :  { %v129_v43 = vsel %vm128_vm3, %v438_v17, %v125_v40  ;;  %v428_v40 = vld [vmem:[%s840_s5 + $0x1] ss:$0 sm:$0xff] }
  0x30   :  { %267 = vmatpush.msra.mxu1 %v238_v32  ;;  %v130_v44 = vmul.f32 %v129_v43, %v118_v36 }
  0x32   :  { %268 = vmatpush.msra.mxu1 %v237_v37  ;;  %v134_v49 = vmul.f32 %v425_v41, %v130_v44 }
  0x34   :  { %v138_v52 = vadd.f32 %v426_v45, %v134_v49 }
  0x36   :  { %289 = vmatmul.f32.vlgmr.msra.gmra.mxu2 %v138_v52 }
  0x9e   :  { %v82_v18 = vpop.f32.mrf.mxu0 }
  0x9f   :  { %v83_v20 = vadd.f32 %v424_v11, %v82_v18 }
  0xa1   :  { %439 = vtanh.f32 %v83_v20 }
  0xa6   :  { %v85_v35 = vpop.f32.mrf.mxu0 }
  0xa7   :  { %v723_v38 = vpop.eup %439  ;;  %v86_v39 = vadd.f32 %v424_v11, %v85_v35  ;;  %v294_v11 = vld [vmem:[%s842_s6 + $0x108] sm:$0xff]  ;;  %v427_v35 = vld [vmem:[%s839_s4 + $0x1] ss:$0 sm:$0xff] }
  0xa8   :  { %v141_v42 = vrot.slane %v723_v38, 4  ;;  %v148_v21 = vmul.f32 %v723_v38, %v723_v38  ;;  %323 = vmatpush.msra.mxu3 %v294_v11 }
  0xa9   :  { %441 = vtanh.f32 %v86_v39 }
  0xaa   :  { %v142_v46 = vadd.f32 %v723_v38, %v141_v42  ;;  %v149_v48 = vrot.slane %v148_v21, 4  ;;  %324 = vmatpush.msra.mxu3 %v293_v15 }
  0xac   :  { %v143_v50 = vrot.slane %v142_v46, 2  ;;  %v150_v51 = vadd.f32 %v149_v48, %v148_v21 }
  0xae   :  { %v144_v53 = vadd.f32 %v143_v50, %v142_v46  ;;  %v151_v54 = vrot.slane %v150_v51, 2  ;;  %v429_v46 = vld [vmem:[%s839_s4 + $0x2] ss:$0 sm:$0xff] }
  0xaf   :  { %v735_v55 = vpop.eup %441  ;;  %v430_v50 = vld [vmem:[%s840_s5 + $0x2] ss:$0 sm:$0xff] }
  0xb0   :  { %v145_v56 = vrot.slane %v144_v53, 1  ;;  %v152_v57 = vadd.f32 %v151_v54, %v150_v51  ;;  %v182_v58 = vrot.slane %v735_v55, 4  ;;  %v189_v59 = vmul.f32 %v735_v55, %v735_v55  ;;  %v391_v54 = vld [vmem:[%s847_s10 + $0x70] sm:$0xff] }
  0xb2   :  { %v146_v60 = vadd.f32 %v145_v56, %v144_v53  ;;  %v153_v61 = vrot.slane %v152_v57, 1  ;;  %v183_v62 = vadd.f32 %v735_v55, %v182_v58  ;;  %v190_v63 = vrot.slane %v189_v59, 4  ;;  %v392_v53 = vld [vmem:[%s847_s10 + $0x78] sm:$0xff]  ;;  %v389_v56 = vld [vmem:[%s847_s10 + $0x60] sm:$0xff]  ;;  %v387_v58 = vld [vmem:[%s847_s10 + $0x50] sm:$0xff] }
  0xb3   :  { %397 = vmatpush.msrb.mxu0 %v392_v53 }
  0xb4   :  { %v147_v0 = vmul.f32 %v146_v60, %v602_v47  ;;  %v154_v1 = vadd.f32 %v153_v61, %v152_v57  ;;  %v184_v2 = vrot.slane %v183_v62, 2  ;;  %v191_v3 = vadd.f32 %v190_v63, %v189_v59  ;;  %v388_v57 = vld [vmem:[%s847_s10 + $0x58] sm:$0xff]  ;;  %v386_v61 = vld [vmem:[%s847_s10 + $0x48] sm:$0xff]  ;;  %v431_v63 = vld [vmem:[%s843_s7] ss:$0 sm:$0xff] }
  0xb5   :  { %398 = vmatpush.msrb.mxu0 %v391_v54 }
  0xb6   :  { %v155_v4 = vmul.f32 %v154_v1, %v602_v47  ;;  %v156_v5 = vmul.f32 %v147_v0, %v147_v0  ;;  %v185_v8 = vadd.f32 %v184_v2, %v183_v62  ;;  %v192_v9 = vrot.slane %v191_v3, 2 }
  0xb7   :  { %v159_v34 = vsub.f32 %v723_v38, %v147_v0  ;;  %v385_v0 = vld [vmem:[%s847_s10 + $0x40] sm:$0xff] }
  0xb8   :  { %v157_v10 = vsub.f32 %v155_v4, %v156_v5  ;;  %v186_v12 = vrot.slane %v185_v8, 1  ;;  %v193_v13 = vadd.f32 %v192_v9, %v191_v3  ;;  %v384_v3 = vld [vmem:[%s847_s10 + $0x38] sm:$0xff]  ;;  %v383_v5 = vld [vmem:[%s847_s10 + $0x30] sm:$0xff] }
  0xb9   :  { %v290_v60 = vpop.f32.mrf.mxu2 }
  0xba   :  { %v158_v14 = vmax.f32 %v157_v10, 0.0  ;;  %v187_v16 = vadd.f32 %v186_v12, %v185_v8  ;;  %v194_v17 = vrot.slane %v193_v13, 1  ;;  %v381_v10 = vld [vmem:[%s847_s10 + $0x20] sm:$0xff] }
  0xbc   :  { %v160_v18 = vadd.f32 1e-05, %v158_v14  ;;  %v188_v19 = vmul.f32 %v187_v16, %v602_v47  ;;  %v195_v20 = vadd.f32 %v194_v17, %v193_v13  ;;  %v380_v13 = vld [vmem:[%s847_s10 + $0x18] sm:$0xff]  ;;  %v379_v16 = vld [vmem:[%s847_s10 + $0x10] sm:$0xff] }
  0xbe   :  { %443 = vrsqrt.f32 %v160_v18  ;;  %v197_v22 = vmul.f32 %v188_v19, %v188_v19  ;;  %v196_v23 = vmul.f32 %v195_v20, %v602_v47  ;;  %vm167_vm5 = vweird.f32 %v160_v18 }
  0xbf   :  { %v200_v45 = vsub.f32 %v735_v55, %v188_v19  ;;  %v390_v55 = vld [vmem:[%s847_s10 + $0x68] sm:$0xff] }
  0xc0   :  { %v198_v24 = vsub.f32 %v196_v23, %v197_v22  ;;  %399 = vmatpush.msrb.mxu0 %v390_v55  ;;  %v378_v19 = vld [vmem:[%s847_s10 + $0x8] sm:$0xff]  ;;  %v377_v23 = vld [vmem:[%s847_s10] sm:$0xff] }
  0xc2   :  { %v199_v25 = vmax.f32 %v198_v24, 0.0  ;;  %400 = vmatpush.msrb.mxu0 %v389_v56 }
  0xc4   :  { %v444_v26 = vpop.eup %443  ;;  %v201_v28 = vadd.f32 1e-05, %v199_v25  ;;  %401 = vmatpush.msrb.mxu0 %v388_v57 }
  0xc5   :  { %v162_v27 = vmul.f32 %v444_v26, %v160_v18  ;;  %vm168_vm4 = vweird.f32 %v444_v26 }
  0xc6   :  { %445 = vrsqrt.f32 %v201_v28  ;;  %vm169_vm6 = vmor %vm167_vm5, %vm168_vm4  ;;  %vm208_vm8 = vweird.f32 %v201_v28  ;;  %402 = vmatpush.msrb.mxu0 %v387_v58 }
  0xc7   :  { %v163_v29 = vmul.f32 %v444_v26, %v162_v27 }
  0xc8   :  { %403 = vmatpush.msrb.mxu0 %v386_v61 }
  0xc9   :  { %v164_v30 = vmul.f32 0.5, %v163_v29 }
  0xca   :  { %404 = vmatpush.msrb.mxu0 %v385_v0 }
  0xcb   :  { %v165_v31 = vsub.f32 1.5, %v164_v30 }
  0xcc   :  { %v446_v32 = vpop.eup %445  ;;  %405 = vmatpush.msrb.mxu0 %v384_v3 }
  0xcd   :  { %v166_v33 = vmul.f32 %v444_v26, %v165_v31  ;;  %v203_v36 = vmul.f32 %v446_v32, %v201_v28  ;;  %vm209_vm7 = vweird.f32 %v446_v32 }
  0xce   :  { %vm210_vm9 = vmor %vm208_vm8, %vm209_vm7  ;;  %406 = vmatpush.msrb.mxu0 %v383_v5 }
  0xcf   :  { %v170_v37 = vsel %vm169_vm6, %v444_v26, %v166_v33  ;;  %v204_v41 = vmul.f32 %v446_v32, %v203_v36 }
  0xd0   :  { %v171_v39 = vmul.f32 %v170_v37, %v159_v34  ;;  %407 = vmatpush.msrb.mxu0 %v382_v7 }
  0xd1   :  { %v205_v21 = vmul.f32 0.5, %v204_v41  ;;  %v432_v41 = vld [vmem:[%s844_s8] ss:$0 sm:$0xff] }
  0xd2   :  { %v175_v42 = vmul.f32 %v427_v35, %v171_v39  ;;  %408 = vmatpush.msrb.mxu0 %v381_v10 }
  0xd3   :  { %v206_v44 = vsub.f32 1.5, %v205_v21  ;;  %v433_v21 = vld [vmem:[%s845_s9] ss:$0 sm:$0xff] }
  0xd4   :  { %v179_v43 = vadd.f32 %v428_v40, %v175_v42  ;;  %409 = vmatpush.msrb.mxu0 %v380_v13 }
  0xd5   :  { %v207_v38 = vmul.f32 %v446_v32, %v206_v44 }
  0xd6   :  { %269 = vmatmul.f32.vlgmr.msra.gmra.mxu1 %v179_v43  ;;  %410 = vmatpush.msrb.mxu0 %v379_v16 }
  0xd7   :  { %v211_v48 = vsel %vm210_vm9, %v446_v32, %v207_v38  ;;  %v434_v38 = vld [vmem:[%s846_s11] ss:$0 sm:$0xff] }
  0xd8   :  { %v212_v49 = vmul.f32 %v211_v48, %v200_v45  ;;  %411 = vmatpush.msrb.mxu0 %v378_v19 }
  0xda   :  { %v216_v51 = vmul.f32 %v429_v46, %v212_v49  ;;  %412 = vmatpush.msrb.mxu0 %v377_v23 }
  0xdc   :  { %v220_v52 = vadd.f32 %v430_v50, %v216_v51 }
  0xde   :  { %325 = vmatmul.f32.vlgmr.msra.gmra.mxu3 %v220_v52 }
 0x153   :  { %v270_v59 = vpop.f32.mrf.mxu1 }
 0x154   :  { %v291_v62 = vadd.f32 %v290_v60, %v270_v59 }
 0x161   :  { %v326_v1 = vpop.f32.mrf.mxu3 }
 0x162   :  { %v329_v2 = vadd.f32 %v326_v1, %v291_v62 }
 0x164   :  { %v334_v4 = vadd.f32 %v431_v63, %v329_v2 }
 0x166   :  { %v335_v6 = vmax.f32 %v334_v4, 0.0 }
 0x168   :  { %v338_v8 = vrot.slane %v335_v6, 4  ;;  %v345_v9 = vmul.f32 %v335_v6, %v335_v6 }
 0x16a   :  { %v339_v11 = vadd.f32 %v338_v8, %v335_v6  ;;  %v346_v12 = vrot.slane %v345_v9, 4 }
 0x16c   :  { %v340_v14 = vrot.slane %v339_v11, 2  ;;  %v347_v15 = vadd.f32 %v346_v12, %v345_v9 }
 0x16e   :  { %v341_v17 = vadd.f32 %v340_v14, %v339_v11  ;;  %v348_v18 = vrot.slane %v347_v15, 2 }
 0x170   :  { %v342_v20 = vrot.slane %v341_v17, 1  ;;  %v349_v22 = vadd.f32 %v348_v18, %v347_v15 }
 0x172   :  { %v350_v24 = vrot.slane %v349_v22, 1  ;;  %v343_v25 = vadd.f32 %v342_v20, %v341_v17 }
 0x174   :  { %v351_v26 = vadd.f32 %v350_v24, %v349_v22  ;;  %v344_v27 = vmul.f32 %v343_v25, %v602_v47 }
 0x176   :  { %v352_v28 = vmul.f32 %v351_v26, %v602_v47  ;;  %v353_v29 = vmul.f32 %v344_v27, %v344_v27  ;;  %v356_v40 = vsub.f32 %v335_v6, %v344_v27 }
 0x178   :  { %v354_v30 = vsub.f32 %v352_v28, %v353_v29 }
 0x17a   :  { %v355_v31 = vmax.f32 %v354_v30, 0.0 }
 0x17c   :  { %v357_v32 = vadd.f32 1e-05, %v355_v31 }
 0x17e   :  { %447 = vrsqrt.f32 %v357_v32  ;;  %vm364_vm11 = vweird.f32 %v357_v32 }
 0x184   :  { %v448_v33 = vpop.eup %447 }
 0x185   :  { %v359_v34 = vmul.f32 %v448_v33, %v357_v32  ;;  %vm365_vm10 = vweird.f32 %v448_v33 }
 0x186   :  { %vm366_vm12 = vmor %vm364_vm11, %vm365_vm10 }
 0x187   :  { %v360_v35 = vmul.f32 %v448_v33, %v359_v34 }
 0x189   :  { %v361_v36 = vmul.f32 0.5, %v360_v35 }
 0x18b   :  { %v362_v37 = vsub.f32 1.5, %v361_v36 }
 0x18d   :  { %v363_v39 = vmul.f32 %v448_v33, %v362_v37 }
 0x18f   :  { %v367_v47 = vsel %vm366_vm12, %v448_v33, %v363_v39 }
 0x190   :  { %v368_v42 = vmul.f32 %v367_v47, %v356_v40 }
 0x192   :  { %v372_v43 = vmul.f32 %v432_v41, %v368_v42 }
 0x194   :  { %v376_v44 = vadd.f32 %v433_v21, %v372_v43 }
 0x196   :  { %413 = vmatmul.f32.vlgmr.msrb.gmra.mxu0 %v376_v44 }
 0x213   :  { %v414_v45 = vpop.f32.mrf.mxu0 }
 0x214   :  { %v415_v46 = vadd.f32 %v434_v38, %v414_v45 }
 0x216   :  { %v417_v48 = vmax.f32 %v415_v46, 0.0 }
 0x218   :  { %418 = vst [vmem:[%s848_s12] sm:$0xff] %v417_v48 }

</bundles_post_ra>
